<compile_context>
chip_gen: v5e
topology: v5e:2x2
jax: 0.10.0
libtpu: 0.0.40
codegen_flags: <defaults>
</compile_context>

<pallas_src>
import jax
import jax.numpy as jnp
from jax.experimental import pallas as pl
from jax.experimental.pallas import tpu as pltpu


def _round_up(x, m):
    return ((x + m - 1) // m) * m


def mlp_kernel(x_ref, w1_ref, b1_ref, w2_ref, b2_ref, w3_ref, b3_ref, o_ref):
    # x_ref: (TB, D_in) bf16 ; w1: (D_in, H) bf16 ; w2: (H, H) bf16
    # b1/b2: (1, H) f32 ; w3: (1, H) f32 row ; b3: (1, 1) f32
    # o_ref: (1, 1, TB) f32  -- batch on the lane axis (lane-dense store)
    x = x_ref[...]

    # Layer 1: bf16 MXU matmul, f32 accumulate; bias + ReLU on the VPU in f32.
    h1 = jnp.dot(x, w1_ref[...], preferred_element_type=jnp.float32) + b1_ref[...]
    h1 = jnp.maximum(h1, 0.0)

    # Layer 2: dominant H x H matmul, bf16 inputs, f32 accumulate.
    h2 = jnp.dot(h1.astype(jnp.bfloat16), w2_ref[...],
                 preferred_element_type=jnp.float32) + b2_ref[...]
    h2 = jnp.maximum(h2, 0.0)

    # Layer 3 (H -> 1): VPU multiply + cross-lane reduce instead of a skinny
    # (TB,128)@(128,1) MXU pass.
    res = jnp.sum(h2 * w3_ref[...], axis=-1)              # (TB,) f32
    out_row = res[None, :] + b3_ref[...]                  # (1, TB), lane-dense
    o_ref[0] = out_row.astype(o_ref.dtype)


def mlp_regressor_forward(x, params, *, tile_b=None):
    """x: (B, input_dim). Returns (B,) float32 (matches fc3(x).squeeze(-1))."""
    w1, b1, w2, b2, w3, b3 = params
    B, D_in = x.shape
    H = w1.shape[1]

    # Batch tile: multiple of 128 (lane width), capped at 512 so the x tile +
    # h1/h2 temps stay tiny in VMEM and the grid has multiple steps.
    if tile_b is None:
        tile_b = min(512, _round_up(B, 128))
    assert tile_b % 128 == 0

    B_pad = _round_up(B, tile_b)
    if B_pad != B:
        x = jnp.pad(x, ((0, B_pad - B), (0, 0)))
    num_tiles = B_pad // tile_b

    # bf16 for the MXU inputs / x stream; accumulation and epilogues stay f32.
    x_bf = x.astype(jnp.bfloat16)
    w1_bf = w1.astype(jnp.bfloat16)
    w2_bf = w2.astype(jnp.bfloat16)
    b1_f = b1.astype(jnp.float32).reshape(1, H)
    b2_f = b2.astype(jnp.float32).reshape(1, H)
    w3_row = w3.astype(jnp.float32).reshape(1, H)   # (H,1) -> (1,H) row
    b3_f = b3.astype(jnp.float32).reshape(1, 1)

    flops = 2 * B_pad * (D_in * H + H * H + H)
    bytes_accessed = (B_pad * D_in * 2 + B_pad * 4           # x stream + output
                      + D_in * H * 2 + H * H * 2              # bf16 weights
                      + (3 * H + 1) * 4)                      # biases + w3 row

    out3d = pl.pallas_call(
        mlp_kernel,
        out_shape=jax.ShapeDtypeStruct((num_tiles, 1, tile_b), jnp.float32),
        grid_spec=pltpu.PrefetchScalarGridSpec(
            num_scalar_prefetch=0,
            grid=(num_tiles,),
            in_specs=[
                pl.BlockSpec((tile_b, D_in), lambda i: (i, 0)),   # x tile (streamed)
                pl.BlockSpec((D_in, H), lambda i: (0, 0)),        # W1 (grid-invariant)
                pl.BlockSpec((1, H), lambda i: (0, 0)),           # b1
                pl.BlockSpec((H, H), lambda i: (0, 0)),           # W2
                pl.BlockSpec((1, H), lambda i: (0, 0)),           # b2
                pl.BlockSpec((1, H), lambda i: (0, 0)),           # W3 as a row
                pl.BlockSpec((1, 1), lambda i: (0, 0)),           # b3
            ],
            out_specs=pl.BlockSpec((1, 1, tile_b), lambda i: (i, 0, 0)),
        ),
        compiler_params=pltpu.CompilerParams(
            dimension_semantics=("parallel",),
        ),
        cost_estimate=pl.CostEstimate(
            flops=flops, transcendentals=0, bytes_accessed=bytes_accessed),
    )(x_bf, w1_bf, b1_f, w2_bf, b2_f, w3_row, b3_f)

    return out3d.reshape(B_pad)[:B]


def init_params(key, input_dim, hidden_dim=128):
    """Deterministic init; shapes match nn.Linear layers (weights as (in, out))."""
    k1, k2, k3, k4, k5, k6 = jax.random.split(key, 6)
    w1 = jax.random.normal(k1, (input_dim, hidden_dim), jnp.float32) * 0.05
    b1 = jax.random.normal(k2, (1, hidden_dim), jnp.float32) * 0.05
    w2 = jax.random.normal(k3, (hidden_dim, hidden_dim), jnp.float32) * 0.05
    b2 = jax.random.normal(k4, (1, hidden_dim), jnp.float32) * 0.05
    w3 = jax.random.normal(k5, (hidden_dim, 1), jnp.float32) * 0.05
    b3 = jax.random.normal(k6, (1, 1), jnp.float32) * 0.05
    return (w1, b1, w2, b2, w3, b3)


def reference_forward(x, params):
    """Same math as the kernel: bf16 MXU inputs, f32 accumulation/epilogue."""
    w1, b1, w2, b2, w3, b3 = params
    xb = x.astype(jnp.bfloat16)
    h1 = jax.nn.relu(
        jnp.dot(xb, w1.astype(jnp.bfloat16),
                preferred_element_type=jnp.float32) + b1)
    h2 = jax.nn.relu(
        jnp.dot(h1.astype(jnp.bfloat16), w2.astype(jnp.bfloat16),
                preferred_element_type=jnp.float32) + b2)
    return (jnp.dot(h2, w3, preferred_element_type=jnp.float32) + b3)[:, 0]


if __name__ == "__main__":
    key = jax.random.PRNGKey(0)
    kx, kp = jax.random.split(key)

    batch, input_dim, hidden_dim = 8, 32, 128
    x = jax.random.normal(kx, (batch, input_dim), jnp.float32)
    params = init_params(kp, input_dim, hidden_dim)

    out = mlp_regressor_forward(x, params)
    out = jax.block_until_ready(out)

    ref = reference_forward(x, params)
    assert out.shape == (batch,), out.shape
    assert jnp.allclose(out, ref, atol=1e-3, rtol=1e-3), (out, ref)

    print("KERNEL_OK")
</pallas_src>

<mosaic_0001>
module attributes {stable_mosaic.version = 11 : i64} {
  func.func @mlp_kernel(%arg0: i32, %arg1: memref<128x32xbf16, #tpu.memory_space<vmem>>, %arg2: memref<32x128xbf16, #tpu.memory_space<vmem>>, %arg3: memref<1x128xf32, #tpu.memory_space<vmem>>, %arg4: memref<128x128xbf16, #tpu.memory_space<vmem>>, %arg5: memref<1x128xf32, #tpu.memory_space<vmem>>, %arg6: memref<1x128xf32, #tpu.memory_space<vmem>>, %arg7: memref<1x1xf32, #tpu.memory_space<vmem>>, %arg8: memref<1x1x128xf32, #tpu.memory_space<vmem>>) attributes {dimension_semantics = [#tpu.dimension_semantics<parallel>], iteration_bounds = array<i64: 1>, scalar_prefetch = 0 : i64, scratch_operands = 0 : i64, tpu.core_type = #tpu.core_type<tc>, window_params = [{transform_indices = @transform_0, window_bounds = array<i64: 128, 32>}, {pipeline_mode = #tpu.pipeline_mode<synchronous>, transform_indices = @transform_1, window_bounds = array<i64: 32, 128>}, {pipeline_mode = #tpu.pipeline_mode<synchronous>, transform_indices = @transform_2, window_bounds = array<i64: 1, 128>}, {pipeline_mode = #tpu.pipeline_mode<synchronous>, transform_indices = @transform_3, window_bounds = array<i64: 128, 128>}, {pipeline_mode = #tpu.pipeline_mode<synchronous>, transform_indices = @transform_4, window_bounds = array<i64: 1, 128>}, {pipeline_mode = #tpu.pipeline_mode<synchronous>, transform_indices = @transform_5, window_bounds = array<i64: 1, 128>}, {pipeline_mode = #tpu.pipeline_mode<synchronous>, transform_indices = @transform_6, window_bounds = array<i64: 1, 1>}, {transform_indices = @transform_7, window_bounds = array<i64: 1, 1, 128>}]} {
    %c0 = arith.constant 0 : index
    %c0_0 = arith.constant 0 : index
    %0 = vector.load %arg1[%c0, %c0_0] : memref<128x32xbf16, #tpu.memory_space<vmem>>, vector<128x32xbf16>
    %c0_1 = arith.constant 0 : index
    %c0_2 = arith.constant 0 : index
    %1 = vector.load %arg2[%c0_1, %c0_2] : memref<32x128xbf16, #tpu.memory_space<vmem>>, vector<32x128xbf16>
    %cst = arith.constant dense<0.000000e+00> : vector<128x128xf32>
    %2 = tpu.matmul %0, %1, %cst {dimension_numbers = #tpu.dot_dimension_numbers<[1], [0], [0], [1], [0, 0, 1, 1], [], []>} : vector<128x32xbf16>, vector<32x128xbf16>, vector<128x128xf32> -> vector<128x128xf32>
    %c0_3 = arith.constant 0 : index
    %c0_4 = arith.constant 0 : index
    %3 = vector.load %arg3[%c0_3, %c0_4] : memref<1x128xf32, #tpu.memory_space<vmem>>, vector<1x128xf32>
    %4 = vector.broadcast %3 : vector<1x128xf32> to vector<128x128xf32>
    %5 = arith.addf %2, %4 : vector<128x128xf32>
    %cst_5 = arith.constant 0.000000e+00 : f32
    %6 = vector.broadcast %cst_5 : f32 to vector<128x128xf32>
    %7 = arith.maximumf %5, %6 : vector<128x128xf32>
    %8 = arith.truncf %7 : vector<128x128xf32> to vector<128x128xbf16>
    %c0_6 = arith.constant 0 : index
    %c0_7 = arith.constant 0 : index
    %9 = vector.load %arg4[%c0_6, %c0_7] : memref<128x128xbf16, #tpu.memory_space<vmem>>, vector<128x128xbf16>
    %cst_8 = arith.constant dense<0.000000e+00> : vector<128x128xf32>
    %10 = tpu.matmul %8, %9, %cst_8 {dimension_numbers = #tpu.dot_dimension_numbers<[1], [0], [0], [1], [0, 0, 1, 1], [], []>} : vector<128x128xbf16>, vector<128x128xbf16>, vector<128x128xf32> -> vector<128x128xf32>
    %c0_9 = arith.constant 0 : index
    %c0_10 = arith.constant 0 : index
    %11 = vector.load %arg5[%c0_9, %c0_10] : memref<1x128xf32, #tpu.memory_space<vmem>>, vector<1x128xf32>
    %12 = vector.broadcast %11 : vector<1x128xf32> to vector<128x128xf32>
    %13 = arith.addf %10, %12 : vector<128x128xf32>
    %cst_11 = arith.constant 0.000000e+00 : f32
    %14 = vector.broadcast %cst_11 : f32 to vector<128x128xf32>
    %15 = arith.maximumf %13, %14 : vector<128x128xf32>
    %c0_12 = arith.constant 0 : index
    %c0_13 = arith.constant 0 : index
    %16 = vector.load %arg6[%c0_12, %c0_13] : memref<1x128xf32, #tpu.memory_space<vmem>>, vector<1x128xf32>
    %17 = vector.broadcast %16 : vector<1x128xf32> to vector<128x128xf32>
    %18 = arith.mulf %15, %17 : vector<128x128xf32>
    %cst_14 = arith.constant dense<0.000000e+00> : vector<128xf32>
    %19 = vector.multi_reduction <add>, %18, %cst_14 [1] : vector<128x128xf32> to vector<128xf32>
    %20 = vector.shape_cast %19 : vector<128xf32> to vector<1x128xf32>
    %c0_15 = arith.constant 0 : index
    %c0_16 = arith.constant 0 : index
    %21 = vector.load %arg7[%c0_15, %c0_16] : memref<1x1xf32, #tpu.memory_space<vmem>>, vector<1x1xf32>
    %22 = vector.broadcast %21 : vector<1x1xf32> to vector<1x128xf32>
    %23 = arith.addf %20, %22 : vector<1x128xf32>
    %c0_17 = arith.constant 0 : index
    %c0_18 = arith.constant 0 : index
    %c0_19 = arith.constant 0 : index
    %24 = vector.load %arg8[%c0_17, %c0_18, %c0_19] : memref<1x1x128xf32, #tpu.memory_space<vmem>>, vector<1x1x128xf32>
    %25 = vector.shape_cast %24 : vector<1x1x128xf32> to vector<1x128xf32>
    %26 = vector.shape_cast %23 : vector<1x128xf32> to vector<1x1x128xf32>
    tpu.vector_store %arg8[%c0_17, %c0_18, %c0_19], %26 {strides = array<i32>} : memref<1x1x128xf32, #tpu.memory_space<vmem>>, vector<1x1x128xf32>,
    return
  }
  func.func @transform_0(%arg0: i32) -> (i32, i32) {
    %c0_i32 = arith.constant 0 : i32
    %c0_i32_0 = arith.constant 0 : i32
    return %arg0, %c0_i32 : i32, i32
  }
  func.func @transform_1(%arg0: i32) -> (i32, i32) {
    %c0_i32 = arith.constant 0 : i32
    %c0_i32_0 = arith.constant 0 : i32
    %c0_i32_1 = arith.constant 0 : i32
    return %c0_i32, %c0_i32_0 : i32, i32
  }
  func.func @transform_2(%arg0: i32) -> (i32, i32) {
    %c0_i32 = arith.constant 0 : i32
    %c0_i32_0 = arith.constant 0 : i32
    %c0_i32_1 = arith.constant 0 : i32
    return %c0_i32, %c0_i32_0 : i32, i32
  }
  func.func @transform_3(%arg0: i32) -> (i32, i32) {
    %c0_i32 = arith.constant 0 : i32
    %c0_i32_0 = arith.constant 0 : i32
    %c0_i32_1 = arith.constant 0 : i32
    return %c0_i32, %c0_i32_0 : i32, i32
  }
  func.func @transform_4(%arg0: i32) -> (i32, i32) {
    %c0_i32 = arith.constant 0 : i32
    %c0_i32_0 = arith.constant 0 : i32
    %c0_i32_1 = arith.constant 0 : i32
    return %c0_i32, %c0_i32_0 : i32, i32
  }
  func.func @transform_5(%arg0: i32) -> (i32, i32) {
    %c0_i32 = arith.constant 0 : i32
    %c0_i32_0 = arith.constant 0 : i32
    %c0_i32_1 = arith.constant 0 : i32
    return %c0_i32, %c0_i32_0 : i32, i32
  }
  func.func @transform_6(%arg0: i32) -> (i32, i32) {
    %c0_i32 = arith.constant 0 : i32
    %c0_i32_0 = arith.constant 0 : i32
    %c0_i32_1 = arith.constant 0 : i32
    return %c0_i32, %c0_i32_0 : i32, i32
  }
  func.func @transform_7(%arg0: i32) -> (i32, i32, i32) {
    %c0_i32 = arith.constant 0 : i32
    %c0_i32_0 = arith.constant 0 : i32
    %c0_i32_1 = arith.constant 0 : i32
    return %arg0, %c0_i32, %c0_i32_0 : i32, i32, i32
  }
}

</mosaic_0001>

<bundles_post_ra>
// kernel: tpu_custom_call.1
= control target key start
LH: loop header
LB: loop body
LE: loop exit
PB: predicated region body
PF: predicated region fallthrough
CT: control target
= control target key end

     0   :  { %s865_s0 = inlined_call_operand.vmem [shape: bf16[128,32], index: 0, kind: input, shape index: {}]   ;;  %s866_s1 = inlined_call_operand.vmem [shape: bf16[32,128], index: 1, kind: input, shape index: {}]   ;;  %s867_s2 = inlined_call_operand.vmem [shape: f32[1,128], index: 2, kind: input, shape index: {}]   ;;  %s868_s3 = inlined_call_operand.vmem [shape: bf16[128,128], index: 3, kind: input, shape index: {}]   ;;  %s869_s4 = inlined_call_operand.vmem [shape: f32[1,128], index: 4, kind: input, shape index: {}]   ;;  %s870_s5 = inlined_call_operand.vmem [shape: f32[1,128], index: 5, kind: input, shape index: {}]   ;;  %s871_s6 = inlined_call_operand.<no memory space> [shape: f32[1,1], index: 6, kind: input, shape index: {}]   ;;  %s872_s7 = inlined_call_operand.hbm [shape: f32[1,1,128], index: 7, kind: output, shape index: {}]  }
   0x1   :  { %v12_v0 = vstv %s871_s6 }
   0x2   :  { %13 = vst [vmem:[#allocation2] sm:$0x1] %v12_v0 }
   0x3   :  { %v598_v1 = vld [vmem:[%s866_s1 + $0x8] sm:$0xff]  ;;  %v597_v2 = vld [vmem:[%s866_s1] sm:$0xff] }
   0x4   :  { %137 = vmatpush.bf16.msra.mxu0 %v598_v1  ;;  %607 = vmatpush.bf16.msra.mxu3 %v598_v1 }
   0x5   :  { %14 = vsyncpa [#allocation4], 0  ;;  %v589_v3 = vld [vmem:[%s865_s0] sm:$0xff]  ;;  %vm106_vm0 = vcmask 261120   ;;  %v590_v4 = vld [vmem:[%s865_s0 + $0x8] sm:$0xff]  ;;  %v649_v51 = vmov 0  }
   0x6   :  { %v591_v5 = vld [vmem:[%s865_s0 + $0x10] sm:$0xff]  ;;  %v594_v6 = vld [vmem:[%s865_s0 + $0x28] sm:$0xff]  ;;  %v606_v7 = vld [vmem:[%s868_s3 + $0x38] sm:$0xff]  ;;  %619 = vset.pattern.permute.xlu0 %v649_v51  ;;  %vm433_vm1 = vcmask 130112   ;;  %vm437_vm2 = vcmask 195712   ;;  %vm441_vm3 = vcmask 261312  }
   0x7   :  { %272 = vmatpush.bf16.msra.mxu1 %v606_v7  ;;  %v605_v8 = vld [vmem:[%s868_s3 + $0x30] sm:$0xff]  ;;  %609 = vmatpush.bf16.msra.mxu2 %v606_v7  ;;  %v604_v9 = vld [vmem:[%s868_s3 + $0x28] sm:$0xff]  ;;  %v592_v10 = vld [vmem:[%s865_s0 + $0x18] sm:$0xff]  ;;  %vm445_vm4 = vcmask 326912   ;;  %vm449_vm5 = vcmask 392512   ;;  %vm453_vm6 = vcmask 458112  }
   0x8   :  { %138 = vmatpush.bf16.msra.mxu0 %v597_v2  ;;  %608 = vmatpush.bf16.msra.mxu3 %v597_v2  ;;  %v603_v11 = vld [vmem:[%s868_s3 + $0x20] sm:$0xff]  ;;  %v595_v12 = vld [vmem:[%s865_s0 + $0x30] sm:$0xff]  ;;  %v596_v14 = vld [vmem:[%s865_s0 + $0x38] sm:$0xff]  ;;  %vm457_vm7 = vcmask 523712   ;;  %vm461_vm8 = vcmask 589312   ;;  %vm465_vm9 = vcmask 654912  }
   0x9   :  { %v593_v13 = vld [vmem:[%s865_s0 + $0x20] sm:$0xff]  ;;  %v602_v15 = vld [vmem:[%s868_s3 + $0x18] sm:$0xff]  ;;  %v601_v16 = vld [vmem:[%s868_s3 + $0x10] sm:$0xff]  ;;  %vm469_vm10 = vcmask 720512   ;;  %vm473_vm11 = vcmask 786112   ;;  %vm477_vm12 = vcmask 851712  }
   0xa   :  { %v600_v17 = vld [vmem:[%s868_s3 + $0x8] sm:$0xff]  ;;  %v599_v18 = vld [vmem:[%s868_s3] sm:$0xff]  ;;  %vm481_vm13 = vcmask 917312   ;;  %vm485_vm14 = vcmask 982912   ;;  %s500_s17 = sshll.u32 %s872_s7, 4  ;;  %vm489_vm15 = vcmask 1048512   ;;  %s501_s17 = int_to_ptr.hbm [resolvable:$true] %s500_s17 }
   0xb   :  { %549 = vmatmul.msk.bf16.vlgmr.msra.gmra.mxu0 %vm106_vm0, %v589_v3  ;;  %554 = vmatmul.msk.bf16.vlgmr.msra.gmra.mxu3 %vm106_vm0, %v594_v6  ;;  %v759_v20 = vld [vmem:[%s867_s2] ss:$0 sm:$0xff] }
   0xc   :  { %273 = vmatpush.bf16.msra.mxu1 %v605_v8  ;;  %610 = vmatpush.bf16.msra.mxu2 %v605_v8  ;;  %v389_v48 = vld [vmem:[#allocation2] sm:$0x1] }
   0xd   :  { %392 = vperm.xlu0 %619, %v389_v48  }
  0x10   :  { %274 = vmatpush.bf16.msra.mxu1 %v604_v9  ;;  %611 = vmatpush.bf16.msra.mxu2 %v604_v9 }
  0x14   :  { %275 = vmatpush.bf16.msra.mxu1 %v603_v11  ;;  %612 = vmatpush.bf16.msra.mxu2 %v603_v11 }
  0x18   :  { %276 = vmatpush.bf16.msra.mxu1 %v602_v15  ;;  %613 = vmatpush.bf16.msra.mxu2 %v602_v15 }
  0x1b   :  { %550 = vmatmul.msk.bf16.gmra.mxu0 %vm106_vm0, %v590_v4  ;;  %555 = vmatmul.msk.bf16.gmra.mxu3 %vm106_vm0, %v595_v12 }
  0x1c   :  { %277 = vmatpush.bf16.msra.mxu1 %v601_v16  ;;  %614 = vmatpush.bf16.msra.mxu2 %v601_v16 }
  0x20   :  { %278 = vmatpush.bf16.msra.mxu1 %v600_v17  ;;  %615 = vmatpush.bf16.msra.mxu2 %v600_v17  ;;  %v786_v17 = vld [vmem:[%s870_s5] ss:$0 sm:$0xff] }
  0x24   :  { %279 = vmatpush.bf16.msra.mxu1 %v599_v18  ;;  %616 = vmatpush.bf16.msra.mxu2 %v599_v18 }
  0x2b   :  { %551 = vmatmul.msk.bf16.gmra.mxu0 %vm106_vm0, %v591_v5  ;;  %556 = vmatmul.msk.bf16.gmra.mxu3 %vm106_vm0, %v596_v14  ;;  %v780_v14 = vld [vmem:[%s869_s4] ss:$0 sm:$0xff]  ;;  %s650_s4 = smov [#allocation3]  }
  0x2c   :  { %s498_s5 = sshll.u32 %s650_s4, 4  ;;  %s499_s5 = int_to_ptr.vmem [resolvable:$true] %s498_s5 }
  0x3b   :  { %552 = vmatmul.msk.bf16.gmra.mxu0 %vm106_vm0, %v592_v10 }
  0x4b   :  { %553 = vmatmul.msk.bf16.gmra.mxu0 %vm106_vm0, %v593_v13 }
  0x88   :  { %v140_v19 = vpop.f32.mrf.mxu0 }
  0x89   :  { %v141_v21 = vadd.f32 %v759_v20, %v140_v19 }
  0x8b   :  { %v180_v24 = vmax.f32 %v141_v21, 0.0 }
  0x8e   :  { %v165_v50 = vpop.f32.mrf.mxu3 }
  0x8f   :  { %v166_v60 = vadd.f32 %v759_v20, %v165_v50 }
  0x90   :  { %v142_v22 = vpop.f32.mrf.mxu0 }
  0x91   :  { %v143_v23 = vadd.f32 %v759_v20, %v142_v22  ;;  %v190_v62 = vmax.f32 %v166_v60, 0.0 }
  0x93   :  { %v181_v25 = vmax.f32 %v143_v23, 0.0 }
  0x95   :  { %v196_v26 = vpack.c.bf16 %v181_v25, %v180_v24 }
  0x96   :  { %v167_v55 = vpop.f32.mrf.mxu3 }
  0x97   :  { %280 = vmatmul.bf16.vlgmr.msra.gmra.mxu1 %v196_v26  ;;  %v168_v61 = vadd.f32 %v759_v20, %v167_v55 }
  0x98   :  { %v145_v27 = vpop.f32.mrf.mxu0 }
  0x99   :  { %v146_v28 = vadd.f32 %v759_v20, %v145_v27  ;;  %v191_v63 = vmax.f32 %v168_v61, 0.0 }
  0x9b   :  { %v182_v31 = vmax.f32 %v146_v28, 0.0  ;;  %v201_v0 = vpack.c.bf16 %v191_v63, %v190_v62 }
  0x9e   :  { %v170_v59 = vpop.f32.mrf.mxu3 }
  0x9f   :  { %v171_v2 = vadd.f32 %v759_v20, %v170_v59 }
  0xa0   :  { %v147_v29 = vpop.f32.mrf.mxu0 }
  0xa1   :  { %v148_v30 = vadd.f32 %v759_v20, %v147_v29  ;;  %v192_v5 = vmax.f32 %v171_v2, 0.0 }
  0xa3   :  { %v183_v32 = vmax.f32 %v148_v30, 0.0 }
  0xa5   :  { %v197_v33 = vpack.c.bf16 %v183_v32, %v182_v31 }
  0xa6   :  { %v172_v1 = vpop.f32.mrf.mxu3 }
  0xa7   :  { %285 = vmatmul.bf16.gmra.mxu1 %v197_v33  ;;  %v173_v3 = vadd.f32 %v759_v20, %v172_v1 }
  0xa8   :  { %v150_v34 = vpop.f32.mrf.mxu0 }
  0xa9   :  { %v151_v35 = vadd.f32 %v759_v20, %v150_v34  ;;  %v193_v6 = vmax.f32 %v173_v3, 0.0 }
  0xab   :  { %v184_v38 = vmax.f32 %v151_v35, 0.0  ;;  %v202_v7 = vpack.c.bf16 %v193_v6, %v192_v5 }
  0xae   :  { %v175_v4 = vpop.f32.mrf.mxu3 }
  0xaf   :  { %v176_v9 = vadd.f32 %v759_v20, %v175_v4 }
  0xb0   :  { %v152_v36 = vpop.f32.mrf.mxu0 }
  0xb1   :  { %v153_v37 = vadd.f32 %v759_v20, %v152_v36  ;;  %v194_v11 = vmax.f32 %v176_v9, 0.0 }
  0xb3   :  { %v185_v39 = vmax.f32 %v153_v37, 0.0 }
  0xb5   :  { %v198_v40 = vpack.c.bf16 %v185_v39, %v184_v38 }
  0xb6   :  { %v177_v8 = vpop.f32.mrf.mxu3 }
  0xb7   :  { %290 = vmatmul.bf16.gmra.mxu1 %v198_v40  ;;  %v178_v10 = vadd.f32 %v759_v20, %v177_v8 }
  0xb8   :  { %v155_v41 = vpop.f32.mrf.mxu0 }
  0xb9   :  { %v156_v42 = vadd.f32 %v759_v20, %v155_v41  ;;  %v195_v12 = vmax.f32 %v178_v10, 0.0 }
  0xbb   :  { %v186_v45 = vmax.f32 %v156_v42, 0.0  ;;  %v203_v13 = vpack.c.bf16 %v195_v12, %v194_v11 }
  0xc0   :  { %v157_v43 = vpop.f32.mrf.mxu0 }
  0xc1   :  { %v158_v44 = vadd.f32 %v759_v20, %v157_v43 }
  0xc3   :  { %v187_v46 = vmax.f32 %v158_v44, 0.0 }
  0xc5   :  { %v199_v47 = vpack.c.bf16 %v187_v46, %v186_v45 }
  0xc7   :  { %295 = vmatmul.bf16.gmra.mxu1 %v199_v47 }
  0xc8   :  { %v160_v49 = vpop.f32.mrf.mxu0 }
  0xc9   :  { %v161_v52 = vadd.f32 %v759_v20, %v160_v49 }
  0xcb   :  { %v188_v56 = vmax.f32 %v161_v52, 0.0 }
  0xd0   :  { %v162_v53 = vpop.f32.mrf.mxu0 }
  0xd1   :  { %v163_v54 = vadd.f32 %v759_v20, %v162_v53 }
  0xd3   :  { %v189_v57 = vmax.f32 %v163_v54, 0.0 }
  0xd5   :  { %v200_v58 = vpack.c.bf16 %v189_v57, %v188_v56 }
  0xd7   :  { %300 = vmatmul.bf16.vlgmr.msra.gmra.mxu2 %v200_v58 }
  0xe7   :  { %305 = vmatmul.bf16.gmra.mxu2 %v201_v0 }
  0xf7   :  { %310 = vmatmul.bf16.gmra.mxu2 %v202_v7 }
 0x107   :  { %315 = vmatmul.bf16.gmra.mxu2 %v203_v13 }
 0x114   :  { %v281_v15 = vpop.f32.mrf.mxu1 }
 0x115   :  { %v282_v16 = vadd.f32 %v780_v14, %v281_v15 }
 0x117   :  { %v321_v18 = vmax.f32 %v282_v16, 0.0 }
 0x119   :  { %v341_v19 = vmul.f32 %v786_v17, %v321_v18 }
 0x11b   :  { %357 = vadd.xlane.f32.xlu0 %v341_v19 }
 0x11c   :  { %v283_v20 = vpop.f32.mrf.mxu1 }
 0x11d   :  { %v284_v21 = vadd.f32 %v780_v14, %v283_v20 }
 0x11f   :  { %v322_v22 = vmax.f32 %v284_v21, 0.0 }
 0x121   :  { %v342_v23 = vmul.f32 %v786_v17, %v322_v22 }
 0x123   :  { %359 = vadd.xlane.f32.xlu1 %v342_v23 }
 0x124   :  { %v286_v24 = vpop.f32.mrf.mxu1 }
 0x125   :  { %v287_v25 = vadd.f32 %v780_v14, %v286_v24 }
 0x127   :  { %v323_v26 = vmax.f32 %v287_v25, 0.0  ;;  %v393_v25 = vpop.permute.xlu0 %392 }
 0x129   :  { %v343_v27 = vmul.f32 %v786_v17, %v323_v26 }
 0x12b   :  { %361 = vadd.xlane.f32.xlu1 %v343_v27  ;;  %v428_v27 = vlaneseq }
 0x12c   :  { %v288_v28 = vpop.f32.mrf.mxu1 }
 0x12d   :  { %v289_v29 = vadd.f32 %v780_v14, %v288_v28 }
 0x12f   :  { %v324_v30 = vmax.f32 %v289_v29, 0.0 }
 0x131   :  { %v344_v31 = vmul.f32 %v786_v17, %v324_v30  ;;  %v819_v30 = vperm.slane %v393_v25, 0 }
 0x133   :  { %363 = vadd.xlane.f32.xlu2 %v344_v31  ;;  %v821_v31 = vand.u32 127, %v428_v27 }
 0x134   :  { %v291_v32 = vpop.f32.mrf.mxu1 }
 0x135   :  { %v292_v33 = vadd.f32 %v780_v14, %v291_v32  ;;  %v487_v25 = vadd.s32 4294967176, %v821_v31 }
 0x137   :  { %v325_v34 = vmax.f32 %v292_v33, 0.0 }
 0x139   :  { %v345_v35 = vmul.f32 %v786_v17, %v325_v34  ;;  %v435_v34 = vadd.s32 4294967280, %v821_v31 }
 0x13b   :  { %365 = vadd.xlane.f32.xlu2 %v345_v35 }
 0x13c   :  { %v293_v36 = vpop.f32.mrf.mxu1 }
 0x13d   :  { %v294_v37 = vadd.f32 %v780_v14, %v293_v36  ;;  %v439_v36 = vadd.s32 4294967272, %v821_v31 }
 0x13f   :  { %v326_v38 = vmax.f32 %v294_v37, 0.0 }
 0x141   :  { %v346_v39 = vmul.f32 %v786_v17, %v326_v38 }
 0x143   :  { %367 = vadd.xlane.f32.xlu1 %v346_v39 }
 0x144   :  { %v296_v40 = vpop.f32.mrf.mxu1 }
 0x145   :  { %v297_v41 = vadd.f32 %v780_v14, %v296_v40  ;;  %v443_v40 = vadd.s32 4294967264, %v821_v31 }
 0x147   :  { %v327_v42 = vmax.f32 %v297_v41, 0.0 }
 0x149   :  { %v347_v43 = vmul.f32 %v786_v17, %v327_v42 }
 0x14b   :  { %369 = vadd.xlane.f32.xlu2 %v347_v43 }
 0x14c   :  { %v298_v44 = vpop.f32.mrf.mxu1 }
 0x14d   :  { %v299_v45 = vadd.f32 %v780_v14, %v298_v44 }
 0x14f   :  { %v328_v46 = vmax.f32 %v299_v45, 0.0 }
 0x151   :  { %v348_v47 = vmul.f32 %v786_v17, %v328_v46  ;;  %v447_v46 = vadd.s32 4294967256, %v821_v31 }
 0x153   :  { %371 = vadd.xlane.f32.xlu1 %v348_v47 }
 0x15a   :  { %v301_v48 = vpop.f32.mrf.mxu2 }
 0x15b   :  { %v302_v49 = vadd.f32 %v780_v14, %v301_v48 }
 0x15d   :  { %v329_v50 = vmax.f32 %v302_v49, 0.0  ;;  %v451_v49 = vadd.s32 4294967248, %v821_v31 }
 0x15f   :  { %v349_v51 = vmul.f32 %v786_v17, %v329_v50 }
 0x161   :  { %373 = vadd.xlane.f32.xlu2 %v349_v51 }
 0x162   :  { %v303_v52 = vpop.f32.mrf.mxu2 }
 0x163   :  { %v304_v53 = vadd.f32 %v780_v14, %v303_v52  ;;  %v455_v52 = vadd.s32 4294967240, %v821_v31 }
 0x165   :  { %v330_v54 = vmax.f32 %v304_v53, 0.0 }
 0x167   :  { %v350_v55 = vmul.f32 %v786_v17, %v330_v54 }
 0x169   :  { %375 = vadd.xlane.f32.xlu1 %v350_v55  ;;  %v459_v55 = vadd.s32 4294967232, %v821_v31 }
 0x16a   :  { %v306_v56 = vpop.f32.mrf.mxu2 }
 0x16b   :  { %v307_v57 = vadd.f32 %v780_v14, %v306_v56 }
 0x16d   :  { %v331_v58 = vmax.f32 %v307_v57, 0.0 }
 0x16f   :  { %v351_v59 = vmul.f32 %v786_v17, %v331_v58 }
 0x171   :  { %377 = vadd.xlane.f32.xlu2 %v351_v59  ;;  %v463_v59 = vadd.s32 4294967224, %v821_v31 }
 0x172   :  { %v308_v60 = vpop.f32.mrf.mxu2 }
 0x173   :  { %v309_v61 = vadd.f32 %v780_v14, %v308_v60 }
 0x175   :  { %v332_v62 = vmax.f32 %v309_v61, 0.0 }
 0x177   :  { %v352_v63 = vmul.f32 %v786_v17, %v332_v62  ;;  %v467_v62 = vadd.s32 4294967216, %v821_v31 }
 0x179   :  { %379 = vadd.xlane.f32.xlu1 %v352_v63 }
 0x17a   :  { %v311_v0 = vpop.f32.mrf.mxu2 }
 0x17b   :  { %v312_v1 = vadd.f32 %v780_v14, %v311_v0 }
 0x17d   :  { %v333_v2 = vmax.f32 %v312_v1, 0.0 }
 0x17f   :  { %v353_v3 = vmul.f32 %v786_v17, %v333_v2 }
 0x181   :  { %381 = vadd.xlane.f32.xlu2 %v353_v3  ;;  %v471_v3 = vadd.s32 4294967208, %v821_v31 }
 0x182   :  { %v313_v4 = vpop.f32.mrf.mxu2 }
 0x183   :  { %v314_v5 = vadd.f32 %v780_v14, %v313_v4 }
 0x185   :  { %v334_v6 = vmax.f32 %v314_v5, 0.0 }
 0x187   :  { %v354_v7 = vmul.f32 %v786_v17, %v334_v6 }
 0x189   :  { %383 = vadd.xlane.f32.xlu1 %v354_v7  ;;  %v475_v7 = vadd.s32 4294967200, %v821_v31 }
 0x18a   :  { %v316_v8 = vpop.f32.mrf.mxu2 }
 0x18b   :  { %v317_v9 = vadd.f32 %v780_v14, %v316_v8 }
 0x18d   :  { %v335_v10 = vmax.f32 %v317_v9, 0.0 }
 0x18f   :  { %v355_v11 = vmul.f32 %v786_v17, %v335_v10 }
 0x191   :  { %385 = vadd.xlane.f32.xlu2 %v355_v11  ;;  %v479_v11 = vadd.s32 4294967192, %v821_v31 }
 0x192   :  { %v318_v12 = vpop.f32.mrf.mxu2 }
 0x193   :  { %v319_v13 = vadd.f32 %v780_v14, %v318_v12  ;;  %v358_v14 = vpop.xlane.xlu0 %357 }
 0x194   :  { %v396_v33 = vadd.f32 %v819_v30, %v358_v14 }
 0x195   :  { %v336_v15 = vmax.f32 %v319_v13, 0.0 }
 0x196   :  { %v360_v18 = vpop.xlane.xlu1 %359  ;;  %v430_v43 = vperm.slane %v396_v33, %v821_v31 }
 0x197   :  { %v356_v16 = vmul.f32 %v786_v17, %v336_v15  ;;  %v431_v17 = vadd.s32 4294967288, %v821_v31  ;;  %v397_v32 = vadd.f32 %v819_v30, %v360_v18 }
 0x199   :  { %387 = vadd.xlane.f32.xlu0 %v356_v16  ;;  %v432_v38 = vperm.slane %v397_v32, %v431_v17  ;;  %v483_v16 = vadd.s32 4294967184, %v821_v31 }
 0x19b   :  { %v434_v48 = vsel %vm433_vm1, %v432_v38, %v430_v43 }
 0x19e   :  { %v362_v20 = vpop.xlane.xlu1 %361 }
 0x19f   :  { %v398_v35 = vadd.f32 %v819_v30, %v362_v20 }
 0x1a1   :  { %v436_v44 = vperm.slane %v398_v35, %v435_v34 }
 0x1a3   :  { %v438_v54 = vsel %vm437_vm2, %v436_v44, %v434_v48 }
 0x1a6   :  { %v364_v19 = vpop.xlane.xlu2 %363 }
 0x1a7   :  { %v399_v37 = vadd.f32 %v819_v30, %v364_v19 }
 0x1a9   :  { %v440_v45 = vperm.slane %v399_v37, %v439_v36 }
 0x1ab   :  { %v442_v57 = vsel %vm441_vm3, %v440_v45, %v438_v54 }
 0x1ae   :  { %v366_v21 = vpop.xlane.xlu2 %365 }
 0x1af   :  { %v400_v41 = vadd.f32 %v819_v30, %v366_v21 }
 0x1b1   :  { %v444_v51 = vperm.slane %v400_v41, %v443_v40 }
 0x1b3   :  { %v446_v1 = vsel %vm445_vm4, %v444_v51, %v442_v57 }
 0x1b6   :  { %v368_v22 = vpop.xlane.xlu1 %367 }
 0x1b7   :  { %v401_v47 = vadd.f32 %v819_v30, %v368_v22 }
 0x1b9   :  { %v448_v58 = vperm.slane %v401_v47, %v447_v46 }
 0x1bb   :  { %v450_v9 = vsel %vm449_vm5, %v448_v58, %v446_v1 }
 0x1be   :  { %v370_v23 = vpop.xlane.xlu2 %369 }
 0x1bf   :  { %v402_v50 = vadd.f32 %v819_v30, %v370_v23 }
 0x1c1   :  { %v452_v61 = vperm.slane %v402_v50, %v451_v49 }
 0x1c3   :  { %v454_v13 = vsel %vm453_vm6, %v452_v61, %v450_v9 }
 0x1c6   :  { %v372_v24 = vpop.xlane.xlu1 %371 }
 0x1c7   :  { %v403_v53 = vadd.f32 %v819_v30, %v372_v24 }
 0x1c9   :  { %v456_v2 = vperm.slane %v403_v53, %v455_v52 }
 0x1cb   :  { %v458_v19 = vsel %vm457_vm7, %v456_v2, %v454_v13 }
 0x1d4   :  { %v374_v26 = vpop.xlane.xlu2 %373 }
 0x1d5   :  { %v404_v56 = vadd.f32 %v819_v30, %v374_v26 }
 0x1d7   :  { %v460_v6 = vperm.slane %v404_v56, %v459_v55 }
 0x1d9   :  { %v462_v21 = vsel %vm461_vm8, %v460_v6, %v458_v19 }
 0x1dc   :  { %v376_v28 = vpop.xlane.xlu1 %375 }
 0x1dd   :  { %v405_v60 = vadd.f32 %v819_v30, %v376_v28 }
 0x1df   :  { %v464_v10 = vperm.slane %v405_v60, %v463_v59 }
 0x1e1   :  { %v466_v23 = vsel %vm465_vm9, %v464_v10, %v462_v21 }
 0x1e4   :  { %v378_v29 = vpop.xlane.xlu2 %377 }
 0x1e5   :  { %v406_v63 = vadd.f32 %v819_v30, %v378_v29 }
 0x1e7   :  { %v468_v15 = vperm.slane %v406_v63, %v467_v62 }
 0x1e9   :  { %v470_v26 = vsel %vm469_vm10, %v468_v15, %v466_v23 }
 0x1ec   :  { %v380_v39 = vpop.xlane.xlu1 %379 }
 0x1ed   :  { %v407_v4 = vadd.f32 %v819_v30, %v380_v39 }
 0x1ef   :  { %v472_v20 = vperm.slane %v407_v4, %v471_v3 }
 0x1f1   :  { %v474_v29 = vsel %vm473_vm11, %v472_v20, %v470_v26 }
 0x1f4   :  { %v382_v42 = vpop.xlane.xlu2 %381 }
 0x1f5   :  { %v408_v8 = vadd.f32 %v819_v30, %v382_v42 }
 0x1f7   :  { %v476_v22 = vperm.slane %v408_v8, %v475_v7 }
 0x1f9   :  { %v478_v17 = vsel %vm477_vm12, %v476_v22, %v474_v29 }
 0x1fc   :  { %v384_v0 = vpop.xlane.xlu1 %383 }
 0x1fd   :  { %v409_v12 = vadd.f32 %v819_v30, %v384_v0 }
 0x1ff   :  { %v480_v24 = vperm.slane %v409_v12, %v479_v11 }
 0x201   :  { %v482_v32 = vsel %vm481_vm13, %v480_v24, %v478_v17 }
 0x204   :  { %v386_v5 = vpop.xlane.xlu2 %385 }
 0x205   :  { %v410_v18 = vadd.f32 %v819_v30, %v386_v5 }
 0x207   :  { %v484_v27 = vperm.slane %v410_v18, %v483_v16 }
 0x209   :  { %v486_v34 = vsel %vm485_vm14, %v484_v27, %v482_v32 }
 0x20c   :  { %v388_v28 = vpop.xlane.xlu0 %387 }
 0x20d   :  { %v411_v14 = vadd.f32 %v819_v30, %v388_v28 }
 0x20f   :  { %v488_v33 = vperm.slane %v411_v14, %v487_v25 }
 0x211   :  { %v490_v31 = vsel %vm489_vm15, %v488_v33, %v486_v34 }
 0x212   :  { %492 = vst [vmem:[#allocation3] sm:$0x1] %v490_v31 }
 0x213   :  { %503 = dma.vmem_to_hbm [thread:$0]  %s499_s5, 16, %s501_s17, [#allocation4]  }
 0x214   :  { %647 = dma.done.wait [#allocation4], 16  }
 0x215   :  { %648 = vsyncadd [#allocation4], 4294967280 }
 0x216   :  { %508 = vsyncpa [#allocation4], 1 }

</bundles_post_ra>
